<compile_context>
chip_gen: v7x
topology: tpu7x:2x2x1
jax: 0.10.0
libtpu: 0.0.40
codegen_flags: <defaults>
</compile_context>

<pallas_src>
import math
from functools import partial

import jax
import jax.numpy as jnp
from jax.experimental import pallas as pl
from jax.experimental.pallas import tpu as pltpu


def _gelu_tanh(x):
    # GELU, tanh approximation (EUP-friendly, works in f32 on all TPU gens).
    c = math.sqrt(2.0 / math.pi)
    return 0.5 * x * (1.0 + jnp.tanh(c * (x + 0.044715 * x * x * x)))


def _encdec_kernel(x_ref, w0_ref, b0_ref, w1_ref, b1_ref, wf_ref, o_ref):
    # x_ref:  (C_in, T)    channels on sublanes, pixels on lanes
    # w0_ref: (HID, C_in)  conv0 weight (out, in)
    # b0_ref: (HID, 1)
    # w1_ref: (HID, HID)
    # b1_ref: (HID, 1)
    # wf_ref: (C_out, HID) final conv weight (no bias)
    # o_ref:  (C_out, T)
    x = x_ref[...].astype(jnp.float32)
    w0 = w0_ref[...].astype(jnp.float32)
    b0 = b0_ref[...].astype(jnp.float32)     # hoisted bias loads (single read)
    w1 = w1_ref[...].astype(jnp.float32)
    b1 = b1_ref[...].astype(jnp.float32)
    wf = wf_ref[...].astype(jnp.float32)

    h = jnp.dot(w0, x, preferred_element_type=jnp.float32) + b0   # (HID, T)
    h = _gelu_tanh(h)
    h = jnp.dot(w1, h, preferred_element_type=jnp.float32) + b1   # (HID, T)
    h = _gelu_tanh(h)
    out = jnp.dot(wf, h, preferred_element_type=jnp.float32)      # (C_out, T)
    o_ref[...] = out.astype(o_ref.dtype)


def encoder_decoder_pallas(x_nchw, params, *, tile_hw=2048, io_dtype=None):
    """x_nchw: (N, C_in, H, W).  params: dict of w0, b0, w1, b1, wf.

    io_dtype: optional dtype (e.g. jnp.bfloat16) for HBM I/O of activations and
    weights; compute inside the kernel stays f32.
    """
    N, C_in, H, W = x_nchw.shape
    w0, b0, w1, b1, wf = (params["w0"], params["b0"], params["w1"],
                          params["b1"], params["wf"])
    hid = w0.shape[0]
    C_out = wf.shape[0]

    HW = H * W
    # Lane-dense pixel tile: multiple of 128, no larger than the padded pixel count.
    tile = max(128, min(int(tile_hw), pl.cdiv(HW, 128) * 128))
    tile = (tile // 128) * 128
    HW_pad = pl.cdiv(HW, tile) * tile

    # NCHW -> (N, C_in, HW): a free reshape (no transpose).  Pad pixels if needed.
    x_flat = x_nchw.reshape(N, C_in, HW)
    if HW_pad != HW:
        x_flat = jnp.pad(x_flat, ((0, 0), (0, 0), (0, HW_pad - HW)))

    if io_dtype is not None:
        x_flat = x_flat.astype(io_dtype)
        w0 = w0.astype(io_dtype)
        b0 = b0.astype(io_dtype)
        w1 = w1.astype(io_dtype)
        b1 = b1.astype(io_dtype)
        wf = wf.astype(io_dtype)

    out_dtype = x_flat.dtype
    grid = (N, HW_pad // tile)

    out = pl.pallas_call(
        _encdec_kernel,
        out_shape=jax.ShapeDtypeStruct((N, C_out, HW_pad), out_dtype),
        grid_spec=pltpu.PrefetchScalarGridSpec(
            num_scalar_prefetch=0,
            grid=grid,
            in_specs=[
                # batch dim squeezed; block (C_in, tile): lane-dense loads.
                pl.BlockSpec((None, C_in, tile), lambda n, t: (n, 0, t)),
                # small weights: full arrays, resident for every grid step.
                pl.BlockSpec((hid, C_in), lambda n, t: (0, 0)),
                pl.BlockSpec((hid, 1), lambda n, t: (0, 0)),
                pl.BlockSpec((hid, hid), lambda n, t: (0, 0)),
                pl.BlockSpec((hid, 1), lambda n, t: (0, 0)),
                pl.BlockSpec((C_out, hid), lambda n, t: (0, 0)),
            ],
            out_specs=pl.BlockSpec((None, C_out, tile), lambda n, t: (n, 0, t)),
        ),
        compiler_params=pltpu.CompilerParams(
            dimension_semantics=("parallel", "parallel")),
    )(x_flat, w0, b0, w1, b1, wf)

    if HW_pad != HW:
        out = out[:, :, :HW]
    # (N, C_out, HW) -> (N, C_out, H, W): free reshape, no transpose.
    return out.reshape(N, C_out, H, W)


def init_params(key, input_dim, hidden_dim, output_dim, gain=1.0):
    """Matches EncoderDecoder.__init__ init scheme (num_layers=2, nchw).

    Conv2d(k=1) weight has shape (out, in, 1, 1); we store it as the plain
    (out, in) matrix since the kernel computes W @ x directly.
    """
    k0, k1, k2 = jax.random.split(key, 3)

    scale0 = math.sqrt(2.0 / input_dim)
    w0 = scale0 * jax.random.normal(k0, (hidden_dim, input_dim), jnp.float32)
    b0 = jnp.zeros((hidden_dim, 1), jnp.float32)

    scale1 = math.sqrt(2.0 / hidden_dim)
    w1 = scale1 * jax.random.normal(k1, (hidden_dim, hidden_dim), jnp.float32)
    b1 = jnp.zeros((hidden_dim, 1), jnp.float32)

    scalef = math.sqrt(gain / hidden_dim)
    wf = scalef * jax.random.normal(k2, (output_dim, hidden_dim), jnp.float32)

    return {"w0": w0, "b0": b0, "w1": w1, "b1": b1, "wf": wf}


def encoder_decoder_ref(x_nchw, params):
    """Pure-JAX reference (1x1 convs == per-pixel channel matmul)."""
    N, C, H, W = x_nchw.shape
    x = x_nchw.reshape(N, C, H * W)
    h = _gelu_tanh(jnp.einsum("oc,ncp->nop", params["w0"], x) + params["b0"][None])
    h = _gelu_tanh(jnp.einsum("oh,nhp->nop", params["w1"], h) + params["b1"][None])
    y = jnp.einsum("oh,nhp->nop", params["wf"], h)
    return y.reshape(N, -1, H, W)


if __name__ == "__main__":
    # num_layers=2, input_dim=4, hidden_dim=32, output_dim=4, act=GELU(tanh)
    N, C_in, H, W = 2, 4, 16, 16
    hidden_dim, output_dim = 32, 4

    key = jax.random.PRNGKey(0)
    kx, kp = jax.random.split(key)
    x = jax.random.normal(kx, (N, C_in, H, W), jnp.float32)
    params = init_params(kp, C_in, hidden_dim, output_dim, gain=1.0)

    ref = encoder_decoder_ref(x, params)

    # Full-precision path (matches module semantics).
    fn = jax.jit(partial(encoder_decoder_pallas, tile_hw=2048))
    out = fn(x, params)
    jax.block_until_ready(out)
    assert out.shape == (N, output_dim, H, W)
    assert jnp.allclose(out, ref, atol=1e-4, rtol=1e-4), "mismatch vs reference (f32)"

    # bf16 HBM-I/O path (f32 accumulation inside the kernel) — halves bytes moved.
    fn_bf16 = jax.jit(partial(encoder_decoder_pallas, tile_hw=2048,
                              io_dtype=jnp.bfloat16))
    out_b = fn_bf16(x, params)
    jax.block_until_ready(out_b)
    assert out_b.shape == (N, output_dim, H, W)
    assert jnp.allclose(out_b.astype(jnp.float32), ref, atol=1e-1, rtol=1e-1), \
        "mismatch vs reference (bf16 I/O)"

    print("KERNEL_OK")
</pallas_src>

<mosaic_0001>
module attributes {stable_mosaic.version = 11 : i64} {
  func.func @_encdec_kernel(%arg0: i32, %arg1: i32, %arg2: memref<1x4x256xf32, #tpu.memory_space<vmem>>, %arg3: memref<32x4xf32, #tpu.memory_space<vmem>>, %arg4: memref<32x1xf32, #tpu.memory_space<vmem>>, %arg5: memref<32x32xf32, #tpu.memory_space<vmem>>, %arg6: memref<32x1xf32, #tpu.memory_space<vmem>>, %arg7: memref<4x32xf32, #tpu.memory_space<vmem>>, %arg8: memref<1x4x256xf32, #tpu.memory_space<vmem>>) attributes {dimension_semantics = [#tpu.dimension_semantics<parallel>, #tpu.dimension_semantics<parallel>], iteration_bounds = array<i64: 2, 1>, scalar_prefetch = 0 : i64, scratch_operands = 0 : i64, tpu.core_type = #tpu.core_type<tc>, window_params = [{transform_indices = @transform_0, window_bounds = array<i64: 1, 4, 256>}, {pipeline_mode = #tpu.pipeline_mode<synchronous>, transform_indices = @transform_1, window_bounds = array<i64: 32, 4>}, {pipeline_mode = #tpu.pipeline_mode<synchronous>, transform_indices = @transform_2, window_bounds = array<i64: 32, 1>}, {pipeline_mode = #tpu.pipeline_mode<synchronous>, transform_indices = @transform_3, window_bounds = array<i64: 32, 32>}, {pipeline_mode = #tpu.pipeline_mode<synchronous>, transform_indices = @transform_4, window_bounds = array<i64: 32, 1>}, {pipeline_mode = #tpu.pipeline_mode<synchronous>, transform_indices = @transform_5, window_bounds = array<i64: 4, 32>}, {transform_indices = @transform_6, window_bounds = array<i64: 1, 4, 256>}]} {
    %c0 = arith.constant 0 : index
    %c0_0 = arith.constant 0 : index
    %c0_1 = arith.constant 0 : index
    %0 = vector.load %arg2[%c0, %c0_0, %c0_1] : memref<1x4x256xf32, #tpu.memory_space<vmem>>, vector<1x4x256xf32>
    %1 = vector.shape_cast %0 : vector<1x4x256xf32> to vector<4x256xf32>
    %c0_2 = arith.constant 0 : index
    %c0_3 = arith.constant 0 : index
    %2 = vector.load %arg3[%c0_2, %c0_3] : memref<32x4xf32, #tpu.memory_space<vmem>>, vector<32x4xf32>
    %c0_4 = arith.constant 0 : index
    %c0_5 = arith.constant 0 : index
    %3 = vector.load %arg4[%c0_4, %c0_5] : memref<32x1xf32, #tpu.memory_space<vmem>>, vector<32x1xf32>
    %c0_6 = arith.constant 0 : index
    %c0_7 = arith.constant 0 : index
    %4 = vector.load %arg5[%c0_6, %c0_7] : memref<32x32xf32, #tpu.memory_space<vmem>>, vector<32x32xf32>
    %c0_8 = arith.constant 0 : index
    %c0_9 = arith.constant 0 : index
    %5 = vector.load %arg6[%c0_8, %c0_9] : memref<32x1xf32, #tpu.memory_space<vmem>>, vector<32x1xf32>
    %c0_10 = arith.constant 0 : index
    %c0_11 = arith.constant 0 : index
    %6 = vector.load %arg7[%c0_10, %c0_11] : memref<4x32xf32, #tpu.memory_space<vmem>>, vector<4x32xf32>
    %cst = arith.constant dense<0.000000e+00> : vector<32x256xf32>
    %7 = tpu.matmul %2, %1, %cst {dimension_numbers = #tpu.dot_dimension_numbers<[1], [0], [0], [1], [0, 0, 1, 1], [], []>} : vector<32x4xf32>, vector<4x256xf32>, vector<32x256xf32> -> vector<32x256xf32>
    %8 = vector.broadcast %3 : vector<32x1xf32> to vector<32x256xf32>
    %9 = arith.addf %7, %8 : vector<32x256xf32>
    %cst_12 = arith.constant 5.000000e-01 : f32
    %10 = vector.broadcast %cst_12 : f32 to vector<32x256xf32>
    %11 = arith.mulf %10, %9 : vector<32x256xf32>
    %cst_13 = arith.constant 4.471500e-02 : f32
    %12 = vector.broadcast %cst_13 : f32 to vector<32x256xf32>
    %13 = arith.mulf %12, %9 : vector<32x256xf32>
    %14 = arith.mulf %13, %9 : vector<32x256xf32>
    %15 = arith.mulf %14, %9 : vector<32x256xf32>
    %16 = arith.addf %9, %15 : vector<32x256xf32>
    %cst_14 = arith.constant 0.797884583 : f32
    %17 = vector.broadcast %cst_14 : f32 to vector<32x256xf32>
    %18 = arith.mulf %17, %16 : vector<32x256xf32>
    %19 = math.tanh %18 : vector<32x256xf32>
    %cst_15 = arith.constant 1.000000e+00 : f32
    %20 = vector.broadcast %cst_15 : f32 to vector<32x256xf32>
    %21 = arith.addf %20, %19 : vector<32x256xf32>
    %22 = arith.mulf %11, %21 : vector<32x256xf32>
    %cst_16 = arith.constant dense<0.000000e+00> : vector<32x256xf32>
    %23 = tpu.matmul %4, %22, %cst_16 {dimension_numbers = #tpu.dot_dimension_numbers<[1], [0], [0], [1], [0, 0, 1, 1], [], []>} : vector<32x32xf32>, vector<32x256xf32>, vector<32x256xf32> -> vector<32x256xf32>
    %24 = vector.broadcast %5 : vector<32x1xf32> to vector<32x256xf32>
    %25 = arith.addf %23, %24 : vector<32x256xf32>
    %cst_17 = arith.constant 5.000000e-01 : f32
    %26 = vector.broadcast %cst_17 : f32 to vector<32x256xf32>
    %27 = arith.mulf %26, %25 : vector<32x256xf32>
    %cst_18 = arith.constant 4.471500e-02 : f32
    %28 = vector.broadcast %cst_18 : f32 to vector<32x256xf32>
    %29 = arith.mulf %28, %25 : vector<32x256xf32>
    %30 = arith.mulf %29, %25 : vector<32x256xf32>
    %31 = arith.mulf %30, %25 : vector<32x256xf32>
    %32 = arith.addf %25, %31 : vector<32x256xf32>
    %cst_19 = arith.constant 0.797884583 : f32
    %33 = vector.broadcast %cst_19 : f32 to vector<32x256xf32>
    %34 = arith.mulf %33, %32 : vector<32x256xf32>
    %35 = math.tanh %34 : vector<32x256xf32>
    %cst_20 = arith.constant 1.000000e+00 : f32
    %36 = vector.broadcast %cst_20 : f32 to vector<32x256xf32>
    %37 = arith.addf %36, %35 : vector<32x256xf32>
    %38 = arith.mulf %27, %37 : vector<32x256xf32>
    %cst_21 = arith.constant dense<0.000000e+00> : vector<4x256xf32>
    %39 = tpu.matmul %6, %38, %cst_21 {dimension_numbers = #tpu.dot_dimension_numbers<[1], [0], [0], [1], [0, 0, 1, 1], [], []>} : vector<4x32xf32>, vector<32x256xf32>, vector<4x256xf32> -> vector<4x256xf32>
    %c0_22 = arith.constant 0 : index
    %c0_23 = arith.constant 0 : index
    %c0_24 = arith.constant 0 : index
    %40 = vector.load %arg8[%c0_22, %c0_23, %c0_24] : memref<1x4x256xf32, #tpu.memory_space<vmem>>, vector<1x4x256xf32>
    %41 = vector.shape_cast %40 : vector<1x4x256xf32> to vector<4x256xf32>
    %42 = vector.shape_cast %39 : vector<4x256xf32> to vector<1x4x256xf32>
    tpu.vector_store %arg8[%c0_22, %c0_23, %c0_24], %42 {strides = array<i32>} : memref<1x4x256xf32, #tpu.memory_space<vmem>>, vector<1x4x256xf32>,
    return
  }
  func.func @transform_0(%arg0: i32, %arg1: i32) -> (i32, i32, i32) {
    %c0_i32 = arith.constant 0 : i32
    %c0_i32_0 = arith.constant 0 : i32
    return %arg0, %c0_i32, %arg1 : i32, i32, i32
  }
  func.func @transform_1(%arg0: i32, %arg1: i32) -> (i32, i32) {
    %c0_i32 = arith.constant 0 : i32
    %c0_i32_0 = arith.constant 0 : i32
    %c0_i32_1 = arith.constant 0 : i32
    return %c0_i32, %c0_i32_0 : i32, i32
  }
  func.func @transform_2(%arg0: i32, %arg1: i32) -> (i32, i32) {
    %c0_i32 = arith.constant 0 : i32
    %c0_i32_0 = arith.constant 0 : i32
    %c0_i32_1 = arith.constant 0 : i32
    return %c0_i32, %c0_i32_0 : i32, i32
  }
  func.func @transform_3(%arg0: i32, %arg1: i32) -> (i32, i32) {
    %c0_i32 = arith.constant 0 : i32
    %c0_i32_0 = arith.constant 0 : i32
    %c0_i32_1 = arith.constant 0 : i32
    return %c0_i32, %c0_i32_0 : i32, i32
  }
  func.func @transform_4(%arg0: i32, %arg1: i32) -> (i32, i32) {
    %c0_i32 = arith.constant 0 : i32
    %c0_i32_0 = arith.constant 0 : i32
    %c0_i32_1 = arith.constant 0 : i32
    return %c0_i32, %c0_i32_0 : i32, i32
  }
  func.func @transform_5(%arg0: i32, %arg1: i32) -> (i32, i32) {
    %c0_i32 = arith.constant 0 : i32
    %c0_i32_0 = arith.constant 0 : i32
    %c0_i32_1 = arith.constant 0 : i32
    return %c0_i32, %c0_i32_0 : i32, i32
  }
  func.func @transform_6(%arg0: i32, %arg1: i32) -> (i32, i32, i32) {
    %c0_i32 = arith.constant 0 : i32
    %c0_i32_0 = arith.constant 0 : i32
    return %arg0, %c0_i32, %arg1 : i32, i32, i32
  }
}

</mosaic_0001>

<bundles_post_ra>
// kernel: encoder_decoder_pallas.1
= control target key start
LH: loop header
LB: loop body
LE: loop exit
PB: predicated region body
PF: predicated region fallthrough
CT: control target
= control target key end

     0   :  { %s1032_s21 = smov 0   ;;  %s1034_s22 = smov 0   ;;  %s1225_s0 = inlined_call_operand.vmem [shape: f32[2,4,256], index: 0, kind: input, shape index: {}]   ;;  %s1226_s1 = inlined_call_operand.vmem [shape: f32[32,4], index: 1, kind: input, shape index: {}]   ;;  %s1227_s2 = inlined_call_operand.vmem [shape: f32[32,1], index: 2, kind: input, shape index: {}]   ;;  %s1228_s3 = inlined_call_operand.vmem [shape: f32[32,32], index: 3, kind: input, shape index: {}]   ;;  %s1229_s4 = inlined_call_operand.vmem [shape: f32[32,1], index: 4, kind: input, shape index: {}]   ;;  %s1230_s5 = inlined_call_operand.vmem [shape: f32[4,32], index: 5, kind: input, shape index: {}]   ;;  %s1231_s6 = inlined_call_operand.vmem [shape: f32[2,4,256], index: 6, kind: output, shape index: {}]  }
   0x1   :  { %s1036_s23 = smov 0  }
   0x2 LB: > { %s28_s24 = sadd.s32 1, %s989_s22  ;;  %p874_p0 = scmp.ge.s32.totalorder %s993_s23, 1  ;;  %s993_s23 = sphi %s1036_s23, %s16_s23   ;;  %s989_s22 = sphi %s1034_s22, %s1233_s22   ;;  %s985_s21 = sphi %s1032_s21, %s1232_s21  }
   0x3   : > { %p30_p1 = scmp.ge.s32.totalorder %s28_s24, 2  ;;  %p233_p2 = scmp.lt.s32.totalorder %s993_s23, 3 }
   0x5   : > { %s1235_s24 = smov (%p30_p1, %s28_s24), 0  ;;  %p234_p3 = pnand %p874_p0, %p233_p2 }
   0x6   : > { %p272_p4 = scmp.lt.s32.totalorder (!%p234_p3), %s985_s21, 1  ;;  %v995_v0 = vmov (!%p234_p3), 0.0   ;;  %v296_v1 = vld [vmem:[%s1227_s2] sm:$0xff] (!%p234_p3)  ;;  %v996_v2 = vmov (!%p234_p3), 0   ;;  %v298_v3 = vld [vmem:[%s1227_s2 + $0x10] sm:$0xff] (!%p234_p3)  ;;  %v297_v4 = vld [vmem:[%s1227_s2 + $0x8] sm:$0xff] (!%p234_p3) }
   0x7   : > { %237 = sbr.rel (%p234_p3) target bundleno = 754 (0x2f2), region = 44  ;;  %413 = vmatprep.mubr.f32.mxu0 (!%p234_p3), %v995_v0  ;;  %607 = vmatprep.mubr.f32.mxu1 (!%p234_p3), %v995_v0  ;;  %v299_v5 = vld [vmem:[%s1227_s2 + $0x18] sm:$0xff] (!%p234_p3)  ;;  %vm344_vm0 = vcmask (!%p234_p3), 1043456   ;;  %v292_v8 = vld [vmem:[%s1226_s1] sm:$0xff] (!%p234_p3)  ;;  %vm331_vm1 = vcmask (!%p234_p3), 31744   ;;  %v305_v10 = vld [vmem:[%s1229_s4 + $0x8] sm:$0xff] (!%p234_p3) }
   0x8   : > { %936 = vset.pattern.permute.xlu0 (!%p234_p3), %v996_v2  ;;  %937 = vset.pattern.permute.xlu1 (!%p234_p3), %v996_v2  ;;  %v304_v9 = vld [vmem:[%s1229_s4] sm:$0xff] (!%p234_p3)  ;;  %v293_v11 = vld [vmem:[%s1226_s1 + $0x8] sm:$0xff] (!%p234_p3)  ;;  %v306_v12 = vld [vmem:[%s1229_s4 + $0x10] sm:$0xff] (!%p234_p3)  ;;  %vm530_vm2 = vcmask (!%p234_p3), 261120  }
   0x9   : > { %311 = vperm.xlu0 (!%p234_p3), %936, %v296_v1   ;;  %321 = vperm.xlu1 (!%p234_p3), %937, %v298_v3   ;;  %v307_v13 = vld [vmem:[%s1229_s4 + $0x18] sm:$0xff] (!%p234_p3)  ;;  %v294_v14 = vld [vmem:[%s1226_s1 + $0x10] sm:$0xff] (!%p234_p3) }
   0xa   : > { %v295_v15 = vld [vmem:[%s1226_s1 + $0x18] sm:$0xff] (!%p234_p3) }
   0xd   : > { %316 = vperm.xlu0 (!%p234_p3), %936, %v297_v4   ;;  %326 = vperm.xlu1 (!%p234_p3), %937, %v299_v5  }
   0xe   : > { %s1237_s21 = smov (!%p272_p4, %s985_s21), 1 }
   0xf   : > { %s892_s29 = sshll.u32 %s1237_s21, 3 }
  0x10   : > { %s279_s12 = scalar_lea.vmem %s1225_s0, %s892_s29  ;;  %s289_s26 = scalar_lea.vmem %s1231_s6, %s892_s29 }
  0x11   : > { %v291_v6 = vld [vmem:[%s279_s12] sm:$0xff]  ;;  %512 = vperm.xlu0 %936, %v304_v9   ;;  %517 = vperm.xlu1 %937, %v305_v10  }
  0x12   : > { %v330_v7 = vcombine.high %v291_v6, %v291_v6 }
  0x14   : > { %879 = vmatprep.subr.msk.mxu0 %vm344_vm0, %v330_v7 }
  0x15   : > { %880 = vmatpush1.msk.msra.mxu0 %vm344_vm0, %v291_v6  ;;  %522 = vperm.xlu0 %936, %v306_v12  }
  0x16   : > { %881 = vmatmul.mubr.msk.f32.vlgmr.msra.gmra.mrb[0].mxu0 %vm331_vm1, %v292_v8  ;;  %527 = vperm.xlu1 %937, %v307_v13  }
  0x17   : > { %419 = vmatprep.mubr.f32.mxu0 %v995_v0 }
  0x1a   : > { %882 = vmatmul.mubr.msk.f32.gmra.mrb[2].mxu0 %vm331_vm1, %v293_v11 }
  0x1b   : > { %425 = vmatprep.mubr.f32.mxu0 %v995_v0 }
  0x1e   : > { %883 = vmatmul.mubr.msk.f32.gmra.mrb[4].mxu0 %vm331_vm1, %v294_v14 }
  0x1f   : > { %431 = vmatprep.mubr.f32.mxu0 %v995_v0 }
  0x22   : > { %884 = vmatmul.mubr.msk.f32.gmra.mrb[6].mxu0 %vm331_vm1, %v295_v15 }
  0x23   : > { %771 = vmatprep.mubr.f32.mxu0 %v995_v0 }
  0x88   : > { %v312_v16 = vpop.permute.xlu0 %311  ;;  %v322_v28 = vpop.permute.xlu1 %321 }
  0x8c   : > { %v317_v22 = vpop.permute.xlu0 %316  ;;  %v327_v46 = vpop.permute.xlu1 %326 }
  0xe9   : > { %v415_v17 = vpop.f32.mrb[0].mxu0 }
  0xea   : > { %v1104_v18 = vadd.f32 %v415_v17, %v312_v16  ;;  %v417_v19 = vpop.f32.mrb[1].mxu0 }
  0xeb   : > { %v1106_v20 = vadd.f32 %v417_v19, %v312_v16 }
  0xec   : > { %v446_v21 = vmul.f32 0.044715, %v1104_v18 }
  0xed   : > { %v447_v23 = vmul.f32 0.044715, %v1106_v20  ;;  %v421_v24 = vpop.f32.mrb[2].mxu0 }
  0xee   : > { %v454_v25 = vmul.f32 %v446_v21, %v1104_v18  ;;  %v1111_v26 = vadd.f32 %v421_v24, %v317_v22  ;;  %v423_v27 = vpop.f32.mrb[3].mxu0  ;;  %v438_v21 = vmul.f32 0.5, %v1104_v18  ;;  %v439_v24 = vmul.f32 0.5, %v1106_v20 }
  0xef   : > { %v1113_v29 = vadd.f32 %v423_v27, %v317_v22  ;;  %v455_v30 = vmul.f32 %v447_v23, %v1106_v20 }
  0xf0   : > { %v448_v31 = vmul.f32 0.044715, %v1111_v26  ;;  %v462_v32 = vmul.f32 %v454_v25, %v1104_v18  ;;  %v440_v22 = vmul.f32 0.5, %v1111_v26 }
  0xf1   : > { %v449_v33 = vmul.f32 0.044715, %v1113_v29  ;;  %v427_v34 = vpop.f32.mrb[4].mxu0  ;;  %v463_v35 = vmul.f32 %v455_v30, %v1106_v20  ;;  %v441_v25 = vmul.f32 0.5, %v1113_v29 }
  0xf2   : > { %v456_v36 = vmul.f32 %v448_v31, %v1111_v26  ;;  %v1121_v37 = vadd.f32 %v427_v34, %v322_v28  ;;  %v429_v38 = vpop.f32.mrb[5].mxu0  ;;  %v470_v39 = vadd.f32 %v462_v32, %v1104_v18 }
  0xf3   : > { %v1124_v40 = vadd.f32 %v429_v38, %v322_v28  ;;  %v457_v41 = vmul.f32 %v449_v33, %v1113_v29  ;;  %v471_v42 = vadd.f32 %v463_v35, %v1106_v20 }
  0xf4   : > { %v450_v43 = vmul.f32 0.044715, %v1121_v37  ;;  %v464_v44 = vmul.f32 %v456_v36, %v1111_v26  ;;  %v478_v45 = vmul.f32 0.7978846, %v470_v39 }
  0xf5   : > { %v451_v47 = vmul.f32 0.044715, %v1124_v40  ;;  %v433_v48 = vpop.f32.mrb[6].mxu0  ;;  %v465_v49 = vmul.f32 %v457_v41, %v1113_v29  ;;  %v479_v50 = vmul.f32 0.7978846, %v471_v42 }
  0xf6   : > { %v458_v51 = vmul.f32 %v450_v43, %v1121_v37  ;;  %v434_v52 = vadd.f32 %v433_v48, %v327_v46  ;;  %v435_v53 = vpop.f32.mrb[7].mxu0  ;;  %v472_v54 = vadd.f32 %v464_v44, %v1111_v26  ;;  %939 = vtanh.f32 %v478_v45 }
  0xf7   : > { %v459_v55 = vmul.f32 %v451_v47, %v1124_v40  ;;  %v436_v56 = vadd.f32 %v435_v53, %v327_v46  ;;  %v473_v57 = vadd.f32 %v465_v49, %v1113_v29  ;;  %941 = vtanh.f32 %v479_v50  ;;  %v513_v53 = vpop.permute.xlu0 %512 }
  0xf8   : > { %v466_v58 = vmul.f32 %v458_v51, %v1121_v37  ;;  %v452_v59 = vmul.f32 0.044715, %v434_v52  ;;  %v480_v60 = vmul.f32 0.7978846, %v472_v54  ;;  %v442_v26 = vmul.f32 0.5, %v1121_v37  ;;  %v300_v51 = vld [vmem:[%s1228_s3] sm:$0xff] }
  0xf9   : > { %v467_v61 = vmul.f32 %v459_v55, %v1124_v40  ;;  %v453_v62 = vmul.f32 0.044715, %v436_v56  ;;  %v481_v63 = vmul.f32 0.7978846, %v473_v57  ;;  %v444_v20 = vmul.f32 0.5, %v434_v52 }
  0xfa   : > { %v460_v1 = vmul.f32 %v452_v59, %v434_v52  ;;  %943 = vtanh.f32 %v480_v60  ;;  %v474_v2 = vadd.f32 %v466_v58, %v1121_v37  ;;  %v443_v29 = vmul.f32 0.5, %v1124_v40  ;;  %v301_v37 = vld [vmem:[%s1228_s3 + $0x8] sm:$0xff]  ;;  %v518_v59 = vpop.permute.xlu1 %517 }
  0xfb   : > { %v461_v3 = vmul.f32 %v453_v62, %v436_v56  ;;  %945 = vtanh.f32 %v481_v63  ;;  %v475_v4 = vadd.f32 %v467_v61, %v1124_v40  ;;  %v445_v43 = vmul.f32 0.5, %v436_v56  ;;  %v302_v40 = vld [vmem:[%s1228_s3 + $0x10] sm:$0xff] }
  0xfc   : > { %v468_v5 = vmul.f32 %v460_v1, %v434_v52  ;;  %v482_v6 = vmul.f32 0.7978846, %v474_v2 }
  0xfd   : > { %v469_v7 = vmul.f32 %v461_v3, %v436_v56  ;;  %v483_v8 = vmul.f32 0.7978846, %v475_v4 }
  0xfe   : > { %v476_v9 = vadd.f32 %v468_v5, %v434_v52  ;;  %947 = vtanh.f32 %v482_v6  ;;  %v303_v52 = vld [vmem:[%s1228_s3 + $0x18] sm:$0xff]  ;;  %v523_v5 = vpop.permute.xlu0 %522 }
  0xff   : > { %v477_v10 = vadd.f32 %v469_v7, %v436_v56  ;;  %949 = vtanh.f32 %v483_v8 }
 0x100   : > { %v940_v11 = vpop.eup %939  ;;  %v484_v12 = vmul.f32 0.7978846, %v476_v9 }
 0x101   : > { %v942_v13 = vpop.eup %941  ;;  %v485_v14 = vmul.f32 0.7978846, %v477_v10  ;;  %v494_v15 = vadd.f32 1.0, %v940_v11 }
 0x102   : > { %951 = vtanh.f32 %v484_v12  ;;  %v495_v17 = vadd.f32 1.0, %v942_v13 }
 0x103   : > { %953 = vtanh.f32 %v485_v14  ;;  %v502_v28 = vmul.f32 %v494_v15, %v438_v21  ;;  %v528_v21 = vpop.permute.xlu1 %527 }
 0x104   : > { %v944_v16 = vpop.eup %943  ;;  %v503_v32 = vmul.f32 %v495_v17, %v439_v24 }
 0x105   : > { %v946_v19 = vpop.eup %945  ;;  %v496_v23 = vadd.f32 1.0, %v944_v16 }
 0x106   : > { %v497_v27 = vadd.f32 1.0, %v946_v19 }
 0x107   : > { %v504_v30 = vmul.f32 %v496_v23, %v440_v22 }
 0x108   : > { %v948_v31 = vpop.eup %947  ;;  %v505_v33 = vmul.f32 %v497_v27, %v441_v25 }
 0x109   : > { %v950_v34 = vpop.eup %949  ;;  %v896_v35 = vpack.c.bf16 %v504_v30, %v502_v28  ;;  %v498_v38 = vadd.f32 1.0, %v948_v31 }
 0x10a   : > { %v894_v36 = vpack.c.bf16 %v505_v33, %v503_v32  ;;  %v499_v18 = vadd.f32 1.0, %v950_v34 }
 0x10b   : > { %v506_v45 = vmul.f32 %v498_v38, %v442_v26 }
 0x10c   : > { %v952_v39 = vpop.eup %951  ;;  %895 = vmatprep.subr.bf16.mxu1 %v894_v36  ;;  %v507_v47 = vmul.f32 %v499_v18, %v443_v29 }
 0x10d   : > { %v954_v41 = vpop.eup %953  ;;  %897 = vmatpush1.bf16.msra.mxu1 %v896_v35  ;;  %v500_v42 = vadd.f32 1.0, %v952_v39 }
 0x10e   : > { %v501_v44 = vadd.f32 1.0, %v954_v41 }
 0x10f   : > { %v508_v46 = vmul.f32 %v500_v42, %v444_v20 }
 0x110   : > { %v509_v48 = vmul.f32 %v501_v44, %v445_v43 }
 0x111   : > { %v900_v49 = vpack.c.bf16 %v508_v46, %v506_v45 }
 0x112   : > { %v898_v50 = vpack.c.bf16 %v509_v48, %v507_v47 }
 0x114   : > { %899 = vmatprep.subr.bf16.mxu1 %v898_v50 }
 0x115   : > { %901 = vmatpush1.bf16.msra.mxu1 %v900_v49 }
 0x118   : > { %885 = vmatmul.mubr.msk.f32.vlgmr.msra.gmra.mrb[0].mxu1 %vm530_vm2, %v300_v51 }
 0x119   : > { %613 = vmatprep.mubr.f32.mxu1 %v995_v0 }
 0x11c   : > { %886 = vmatmul.mubr.msk.f32.gmra.mrb[2].mxu1 %vm530_vm2, %v301_v37 }
 0x11d   : > { %619 = vmatprep.mubr.f32.mxu1 %v995_v0 }
 0x120   : > { %887 = vmatmul.mubr.msk.f32.gmra.mrb[4].mxu1 %vm530_vm2, %v302_v40 }
 0x121   : > { %625 = vmatprep.mubr.f32.mxu1 %v995_v0 }
 0x124   : > { %888 = vmatmul.mubr.msk.f32.gmra.mrb[6].mxu1 %vm530_vm2, %v303_v52 }
 0x1eb   : > { %v609_v54 = vpop.f32.mrb[0].mxu1 }
 0x1ec   : > { %v1165_v55 = vadd.f32 %v609_v54, %v513_v53  ;;  %v611_v56 = vpop.f32.mrb[1].mxu1 }
 0x1ed   : > { %v1167_v57 = vadd.f32 %v611_v56, %v513_v53 }
 0x1ee   : > { %v640_v58 = vmul.f32 0.044715, %v1165_v55  ;;  %v632_v56 = vmul.f32 0.5, %v1165_v55 }
 0x1ef   : > { %v641_v60 = vmul.f32 0.044715, %v1167_v57  ;;  %v615_v61 = vpop.f32.mrb[2].mxu1 }
 0x1f0   : > { %v648_v0 = vmul.f32 %v640_v58, %v1165_v55  ;;  %v1172_v62 = vadd.f32 %v615_v61, %v518_v59  ;;  %v617_v63 = vpop.f32.mrb[3].mxu1 }
 0x1f1   : > { %v649_v1 = vmul.f32 %v641_v60, %v1167_v57  ;;  %v1175_v2 = vadd.f32 %v617_v63, %v518_v59  ;;  %v633_v60 = vmul.f32 0.5, %v1167_v57 }
 0x1f2   : > { %v656_v3 = vmul.f32 %v648_v0, %v1165_v55  ;;  %v642_v4 = vmul.f32 0.044715, %v1172_v62  ;;  %v634_v58 = vmul.f32 0.5, %v1172_v62 }
 0x1f3   : > { %v657_v6 = vmul.f32 %v649_v1, %v1167_v57  ;;  %v643_v7 = vmul.f32 0.044715, %v1175_v2  ;;  %v621_v8 = vpop.f32.mrb[4].mxu1  ;;  %v635_v61 = vmul.f32 0.5, %v1175_v2 }
 0x1f4   : > { %v664_v9 = vadd.f32 %v656_v3, %v1165_v55  ;;  %v650_v10 = vmul.f32 %v642_v4, %v1172_v62  ;;  %v1183_v11 = vadd.f32 %v621_v8, %v523_v5  ;;  %v623_v12 = vpop.f32.mrb[5].mxu1 }
 0x1f5   : > { %v651_v13 = vmul.f32 %v643_v7, %v1175_v2  ;;  %v1186_v14 = vadd.f32 %v623_v12, %v523_v5  ;;  %v665_v15 = vadd.f32 %v657_v6, %v1167_v57 }
 0x1f6   : > { %v672_v16 = vmul.f32 0.7978846, %v664_v9  ;;  %v658_v17 = vmul.f32 %v650_v10, %v1172_v62  ;;  %v644_v19 = vmul.f32 0.044715, %v1183_v11 }
 0x1f7   : > { %v659_v22 = vmul.f32 %v651_v13, %v1175_v2  ;;  %v645_v23 = vmul.f32 0.044715, %v1186_v14  ;;  %v627_v24 = vpop.f32.mrb[6].mxu1  ;;  %v673_v25 = vmul.f32 0.7978846, %v665_v15  ;;  %v637_v13 = vmul.f32 0.5, %v1186_v14 }
 0x1f8   : > { %955 = vtanh.f32 %v672_v16  ;;  %v666_v27 = vadd.f32 %v658_v17, %v1172_v62  ;;  %v652_v28 = vmul.f32 %v644_v19, %v1183_v11  ;;  %v628_v30 = vadd.f32 %v627_v24, %v528_v21  ;;  %v629_v31 = vpop.f32.mrb[7].mxu1 }
 0x1f9   : > { %v653_v32 = vmul.f32 %v645_v23, %v1186_v14  ;;  %v630_v33 = vadd.f32 %v629_v31, %v528_v21  ;;  %v667_v34 = vadd.f32 %v659_v22, %v1175_v2  ;;  %957 = vtanh.f32 %v673_v25  ;;  %v308_v25 = vld [vmem:[%s1230_s5] sm:$0xf] }
 0x1fa   : > { %v674_v35 = vmul.f32 0.7978846, %v666_v27  ;;  %v660_v36 = vmul.f32 %v652_v28, %v1183_v11  ;;  %v646_v38 = vmul.f32 0.044715, %v628_v30  ;;  %v636_v62 = vmul.f32 0.5, %v1183_v11 }
 0x1fb   : > { %v661_v39 = vmul.f32 %v653_v32, %v1186_v14  ;;  %v647_v18 = vmul.f32 0.044715, %v630_v33  ;;  %v675_v41 = vmul.f32 0.7978846, %v667_v34  ;;  %v638_v57 = vmul.f32 0.5, %v628_v30 }
 0x1fc   : > { %959 = vtanh.f32 %v674_v35  ;;  %v668_v26 = vadd.f32 %v660_v36, %v1183_v11  ;;  %v654_v20 = vmul.f32 %v646_v38, %v628_v30  ;;  %v639_v15 = vmul.f32 0.5, %v630_v33 }
 0x1fd   : > { %v655_v42 = vmul.f32 %v647_v18, %v630_v33  ;;  %961 = vtanh.f32 %v675_v41  ;;  %v669_v29 = vadd.f32 %v661_v39, %v1186_v14 }
 0x1fe   : > { %v676_v43 = vmul.f32 0.7978846, %v668_v26  ;;  %v662_v44 = vmul.f32 %v654_v20, %v628_v30 }
 0x1ff   : > { %v663_v45 = vmul.f32 %v655_v42, %v630_v33  ;;  %v677_v46 = vmul.f32 0.7978846, %v669_v29 }
 0x200   : > { %963 = vtanh.f32 %v676_v43  ;;  %v670_v47 = vadd.f32 %v662_v44, %v628_v30 }
 0x201   : > { %v671_v48 = vadd.f32 %v663_v45, %v630_v33  ;;  %965 = vtanh.f32 %v677_v46 }
 0x202   : > { %v956_v49 = vpop.eup %955  ;;  %v678_v50 = vmul.f32 0.7978846, %v670_v47 }
 0x203   : > { %v958_v51 = vpop.eup %957  ;;  %v679_v37 = vmul.f32 0.7978846, %v671_v48  ;;  %v688_v40 = vadd.f32 1.0, %v956_v49 }
 0x204   : > { %967 = vtanh.f32 %v678_v50  ;;  %v689_v53 = vadd.f32 1.0, %v958_v51 }
 0x205   : > { %969 = vtanh.f32 %v679_v37  ;;  %v696_v63 = vmul.f32 %v688_v40, %v632_v56 }
 0x206   : > { %v960_v52 = vpop.eup %959  ;;  %v697_v4 = vmul.f32 %v689_v53, %v633_v60 }
 0x207   : > { %v962_v54 = vpop.eup %961  ;;  %v690_v59 = vadd.f32 1.0, %v960_v52 }
 0x208   : > { %v691_v0 = vadd.f32 1.0, %v962_v54 }
 0x209   : > { %v698_v1 = vmul.f32 %v690_v59, %v634_v58 }
 0x20a   : > { %v964_v3 = vpop.eup %963  ;;  %v699_v5 = vmul.f32 %v691_v0, %v635_v61 }
 0x20b   : > { %v966_v6 = vpop.eup %965  ;;  %v904_v7 = vpack.c.bf16 %v698_v1, %v696_v63  ;;  %v692_v9 = vadd.f32 1.0, %v964_v3 }
 0x20c   : > { %v902_v8 = vpack.c.bf16 %v699_v5, %v697_v4  ;;  %v693_v55 = vadd.f32 1.0, %v966_v6 }
 0x20d   : > { %v700_v17 = vmul.f32 %v692_v9, %v636_v62 }
 0x20e   : > { %v968_v10 = vpop.eup %967  ;;  %903 = vmatprep.subr.bf16.mxu0 %v902_v8  ;;  %v701_v21 = vmul.f32 %v693_v55, %v637_v13 }
 0x20f   : > { %v970_v12 = vpop.eup %969  ;;  %905 = vmatpush1.bf16.msra.mxu0 %v904_v7  ;;  %v694_v2 = vadd.f32 1.0, %v968_v10 }
 0x210   : > { %v695_v16 = vadd.f32 1.0, %v970_v12 }
 0x211   : > { %v702_v19 = vmul.f32 %v694_v2, %v638_v57 }
 0x212   : > { %v703_v22 = vmul.f32 %v695_v16, %v639_v15 }
 0x213   : > { %v908_v23 = vpack.c.bf16 %v702_v19, %v700_v17 }
 0x214   : > { %v906_v24 = vpack.c.bf16 %v703_v22, %v701_v21 }
 0x216   : > { %907 = vmatprep.subr.bf16.mxu0 %v906_v24 }
 0x217   : > { %909 = vmatpush1.bf16.msra.mxu0 %v908_v23 }
 0x21a   : > { %889 = vmatmul.mubr.msk.f32.vlgmr.msra.gmra.mrb[8].mxu0 %vm530_vm2, %v308_v25 }
 0x2ed   : > { %v773_v11 = vpop.f32.mrb[8].mxu0 }
 0x2ee   : > { %v775_v14 = vpop.f32.mrb[9].mxu0 }
 0x2ef   : > { %v780_v27 = vcombine.low %v773_v11, %v775_v14 }
 0x2f1   : > { %782 = vst [vmem:[%s289_s26] sm:$0xff] %v780_v27 }
 0x2f2 PF: > { %s16_s23 = sadd.s32 1, %s993_s23   ;;  %s1232_s21 = smov %s989_s22 }
 0x2f3   : > { %p13_p5 = scmp.ge.s32.totalorder %s16_s23, 4   ;;  %s1233_s22 = smov %s1235_s24 }
 0x2f5   :  { %15 = sbr.rel (!%p13_p5) target bundleno = 2 (0x2), region = 74 }

</bundles_post_ra>
